<compile_context>
chip_gen: v7x
topology: tpu7x:2x2x1
jax: 0.10.0
libtpu: 0.0.40
codegen_flags: <defaults>
</compile_context>

<pallas_src>
import functools
import math

import jax
import jax.numpy as jnp
from jax import lax
from jax.experimental import pallas as pl
from jax.experimental.pallas import tpu as pltpu


# ----------------------------------------------------------------------------
# Kernel 1: fused Q/K/V projection.
#   x2d (TM, E) @ [Wq*scale | Wk | Wv] (E, 3E) + [bq*scale | bk | bv]
#   -> qkv (TM, 3E), stored bf16.
# ----------------------------------------------------------------------------
def _qkv_proj_kernel(x_ref, w_ref, b_ref, qkv_ref):
    qkv = jnp.dot(x_ref[...], w_ref[...],
                  preferred_element_type=jnp.float32)
    qkv = qkv + b_ref[...]                      # bias kept in f32
    qkv_ref[...] = qkv.astype(qkv_ref.dtype)


def _qkv_projection(x2d, wqkv, bqkv, *, row_block, out_dtype,
                    vmem_limit_bytes=None):
    M, E = x2d.shape
    three_e = wqkv.shape[1]
    assert M % row_block == 0 or row_block == M
    grid = (pl.cdiv(M, row_block),)
    return pl.pallas_call(
        _qkv_proj_kernel,
        out_shape=jax.ShapeDtypeStruct((M, three_e), out_dtype),
        grid_spec=pltpu.PrefetchScalarGridSpec(
            num_scalar_prefetch=0,
            grid=grid,
            in_specs=[
                pl.BlockSpec((row_block, E), lambda m: (m, 0)),
                pl.BlockSpec((E, three_e), lambda m: (0, 0)),
                pl.BlockSpec((1, three_e), lambda m: (0, 0)),
            ],
            out_specs=pl.BlockSpec((row_block, three_e), lambda m: (m, 0)),
        ),
        compiler_params=pltpu.CompilerParams(
            dimension_semantics=("parallel",),
            vmem_limit_bytes=vmem_limit_bytes),
    )(x2d, wqkv, bqkv)


# ----------------------------------------------------------------------------
# Kernel 2: flash-style attention over pre-projected q/k/v tiles.
# The 1/sqrt(E) scale was folded into Wq, so scores are a plain dot.
# ----------------------------------------------------------------------------
def _flash_attention_kernel(q_ref, k_ref, v_ref, o_ref, m_sc, l_sc, acc_sc):
    ki = pl.program_id(2)

    @pl.when(ki == 0)
    def _init():
        m_sc[...] = jnp.full(m_sc.shape, -jnp.inf, dtype=m_sc.dtype)
        l_sc[...] = jnp.zeros(l_sc.shape, dtype=l_sc.dtype)
        acc_sc[...] = jnp.zeros(acc_sc.shape, dtype=acc_sc.dtype)

    q = q_ref[0]                                        # (TQ, E) bf16
    k = k_ref[0]                                        # (TK, E) bf16
    v = v_ref[0]                                        # (TK, E) bf16

    # Scores: contract on E for both operands (no explicit k transpose).
    s = lax.dot_general(q, k, (((1,), (1,)), ((), ())),
                        preferred_element_type=jnp.float32)   # (TQ, TK) f32

    # Online softmax update (all state in f32).
    m_prev = m_sc[...]
    m_new = jnp.maximum(m_prev, jnp.max(s, axis=-1, keepdims=True))
    alpha = jnp.exp(m_prev - m_new)
    p = jnp.exp(s - m_new)
    l_sc[...] = alpha * l_sc[...] + jnp.sum(p, axis=-1, keepdims=True)
    acc_sc[...] = alpha * acc_sc[...] + jnp.dot(
        p.astype(v.dtype), v, preferred_element_type=jnp.float32)
    m_sc[...] = m_new

    @pl.when(ki == pl.num_programs(2) - 1)
    def _finalize():
        # Exact f32 divide: runs once per q tile, negligible cost.
        o_ref[0] = (acc_sc[...] / l_sc[...]).astype(o_ref.dtype)


def _pick_block(dim, max_block=512):
    """Largest block <= max_block that tiles `dim`; whole dim if it is small
    or has no nice divisor (a block equal to the full dim is always legal)."""
    if dim <= max_block:
        return dim
    for c in (512, 256, 128, 64, 32, 16, 8):
        if c <= max_block and dim % c == 0:
            return c
    return dim


def prepare_self_attention_params(wq, bq, wk, bk, wv, bv, *,
                                  compute_dtype=jnp.bfloat16):
    """Fuse weights once (hoisted out of the forward path).

    Weights are [in=E, out=E]; biases broadcastable to [1, E]. The 1/sqrt(E)
    softmax scale is folded into the query projection. Weights are cast to
    `compute_dtype` (bf16) for MXU throughput; biases stay f32.
    """
    E = wq.shape[0]
    scale = 1.0 / math.sqrt(E)
    bq = jnp.reshape(bq, (1, E))
    bk = jnp.reshape(bk, (1, E))
    bv = jnp.reshape(bv, (1, E))
    wqkv = jnp.concatenate([wq * scale, wk, wv], axis=1).astype(compute_dtype)
    bqkv = jnp.concatenate([bq * scale, bk, bv], axis=1).astype(jnp.float32)
    return wqkv, bqkv


def self_attention(x, wqkv, bqkv, *, q_block=None, kv_block=None,
                   row_block=None, compute_dtype=jnp.bfloat16,
                   vmem_limit_bytes=None):
    """x: [B, S, E] (any float dtype). wqkv: [E, 3E] fused+scaled, bqkv: [1, 3E]."""
    B, S, E = x.shape
    assert wqkv.shape == (E, 3 * E) and bqkv.shape == (1, 3 * E)

    # ---- Kernel 1: fused QKV projection over all B*S rows at once ----------
    M = B * S
    if row_block is None:
        row_block = _pick_block(M, max_block=1024)
    x2d = x.reshape(M, E).astype(compute_dtype)
    qkv2d = _qkv_projection(x2d, wqkv, bqkv, row_block=row_block,
                            out_dtype=compute_dtype,
                            vmem_limit_bytes=vmem_limit_bytes)
    qkv = qkv2d.reshape(B, S, 3 * E)     # bf16; q | k | v along last dim

    # ---- Kernel 2: flash attention ------------------------------------------
    if q_block is None:
        q_block = _pick_block(S)
    if kv_block is None:
        kv_block = _pick_block(S)
    assert S % q_block == 0 and S % kv_block == 0
    n_q = S // q_block
    n_kv = S // kv_block

    grid_spec = pltpu.PrefetchScalarGridSpec(
        num_scalar_prefetch=0,
        grid=(B, n_q, n_kv),
        in_specs=[
            # q / k / v are sliced out of the same (B, S, 3E) tensor via the
            # last-dim *block* index (0 -> [0:E], 1 -> [E:2E], 2 -> [2E:3E]).
            pl.BlockSpec((1, q_block, E), lambda b, qi, ki: (b, qi, 0)),
            pl.BlockSpec((1, kv_block, E), lambda b, qi, ki: (b, ki, 1)),
            pl.BlockSpec((1, kv_block, E), lambda b, qi, ki: (b, ki, 2)),
        ],
        out_specs=pl.BlockSpec((1, q_block, E), lambda b, qi, ki: (b, qi, 0)),
        scratch_shapes=[
            pltpu.VMEM((q_block, 1), jnp.float32),   # running max
            pltpu.VMEM((q_block, 1), jnp.float32),   # running sum
            pltpu.VMEM((q_block, E), jnp.float32),   # output accumulator
        ],
    )

    return pl.pallas_call(
        _flash_attention_kernel,
        out_shape=jax.ShapeDtypeStruct((B, S, E), x.dtype),
        grid_spec=grid_spec,
        compiler_params=pltpu.CompilerParams(
            dimension_semantics=("parallel", "parallel", "arbitrary"),
            vmem_limit_bytes=vmem_limit_bytes),
    )(qkv, qkv, qkv)


def _reference(x, wq, bq, wk, bk, wv, bv):
    E = x.shape[-1]
    q = x @ wq + bq
    k = x @ wk + bk
    v = x @ wv + bv
    scores = jnp.einsum("bqe,bke->bqk", q, k) / math.sqrt(E)
    w = jax.nn.softmax(scores, axis=-1)
    return jnp.einsum("bqk,bke->bqe", w, v)


if __name__ == "__main__":
    # Small shapes consistent with the module (seq_len=10, embed_size=256;
    # a reduced batch keeps the demo small).
    B, S, E = 4, 10, 256
    key = jax.random.PRNGKey(0)
    kx, kq, kbq, kk, kbk, kv_, kbv = jax.random.split(key, 7)

    x = jax.random.uniform(kx, (B, S, E), dtype=jnp.float32)

    # Deterministic parameter init (PyTorch nn.Linear-style uniform bound).
    bound = 1.0 / math.sqrt(E)
    init = lambda k, shape: jax.random.uniform(
        k, shape, dtype=jnp.float32, minval=-bound, maxval=bound)
    wq, bq = init(kq, (E, E)), init(kbq, (1, E))
    wk, bk = init(kk, (E, E)), init(kbk, (1, E))
    wv, bv = init(kv_, (E, E)), init(kbv, (1, E))

    # Weight fusion / scale folding done once, outside the forward path.
    wqkv, bqkv = prepare_self_attention_params(wq, bq, wk, bk, wv, bv)

    fwd = jax.jit(self_attention)
    out = fwd(x, wqkv, bqkv)
    out = jax.block_until_ready(out)

    ref = _reference(x, wq, bq, wk, bk, wv, bv)
    assert out.shape == (B, S, E)
    # bf16 MXU operands (with f32 accumulation) -> loosened tolerance vs the
    # f32 reference.
    err = float(jnp.max(jnp.abs(out - ref)))
    assert jnp.allclose(out, ref, atol=2e-2, rtol=2e-2), err

    print("KERNEL_OK")
</pallas_src>

<mosaic_0001>
module attributes {stable_mosaic.version = 11 : i64} {
  func.func @_qkv_proj_kernel(%arg0: i32, %arg1: memref<40x256xbf16, #tpu.memory_space<vmem>>, %arg2: memref<256x768xbf16, #tpu.memory_space<vmem>>, %arg3: memref<1x768xf32, #tpu.memory_space<vmem>>, %arg4: memref<40x768xbf16, #tpu.memory_space<vmem>>) attributes {dimension_semantics = [#tpu.dimension_semantics<parallel>], iteration_bounds = array<i64: 1>, scalar_prefetch = 0 : i64, scratch_operands = 0 : i64, tpu.core_type = #tpu.core_type<tc>, window_params = [{transform_indices = @transform_0, window_bounds = array<i64: 40, 256>}, {pipeline_mode = #tpu.pipeline_mode<synchronous>, transform_indices = @transform_1, window_bounds = array<i64: 256, 768>}, {pipeline_mode = #tpu.pipeline_mode<synchronous>, transform_indices = @transform_2, window_bounds = array<i64: 1, 768>}, {transform_indices = @transform_3, window_bounds = array<i64: 40, 768>}]} {
    %c0 = arith.constant 0 : index
    %c0_0 = arith.constant 0 : index
    %0 = vector.load %arg1[%c0, %c0_0] : memref<40x256xbf16, #tpu.memory_space<vmem>>, vector<40x256xbf16>
    %c0_1 = arith.constant 0 : index
    %c0_2 = arith.constant 0 : index
    %1 = vector.load %arg2[%c0_1, %c0_2] : memref<256x768xbf16, #tpu.memory_space<vmem>>, vector<256x768xbf16>
    %cst = arith.constant dense<0.000000e+00> : vector<40x768xf32>
    %2 = tpu.matmul %0, %1, %cst {dimension_numbers = #tpu.dot_dimension_numbers<[1], [0], [0], [1], [0, 0, 1, 1], [], []>} : vector<40x256xbf16>, vector<256x768xbf16>, vector<40x768xf32> -> vector<40x768xf32>
    %c0_3 = arith.constant 0 : index
    %c0_4 = arith.constant 0 : index
    %3 = vector.load %arg3[%c0_3, %c0_4] : memref<1x768xf32, #tpu.memory_space<vmem>>, vector<1x768xf32>
    %4 = vector.broadcast %3 : vector<1x768xf32> to vector<40x768xf32>
    %5 = arith.addf %2, %4 : vector<40x768xf32>
    %6 = arith.truncf %5 : vector<40x768xf32> to vector<40x768xbf16>
    %c0_5 = arith.constant 0 : index
    %c0_6 = arith.constant 0 : index
    %7 = vector.load %arg4[%c0_5, %c0_6] : memref<40x768xbf16, #tpu.memory_space<vmem>>, vector<40x768xbf16>
    tpu.vector_store %arg4[%c0_5, %c0_6], %6 {strides = array<i32>} : memref<40x768xbf16, #tpu.memory_space<vmem>>, vector<40x768xbf16>,
    return
  }
  func.func @transform_0(%arg0: i32) -> (i32, i32) {
    %c0_i32 = arith.constant 0 : i32
    %c0_i32_0 = arith.constant 0 : i32
    return %arg0, %c0_i32 : i32, i32
  }
  func.func @transform_1(%arg0: i32) -> (i32, i32) {
    %c0_i32 = arith.constant 0 : i32
    %c0_i32_0 = arith.constant 0 : i32
    %c0_i32_1 = arith.constant 0 : i32
    return %c0_i32, %c0_i32_0 : i32, i32
  }
  func.func @transform_2(%arg0: i32) -> (i32, i32) {
    %c0_i32 = arith.constant 0 : i32
    %c0_i32_0 = arith.constant 0 : i32
    %c0_i32_1 = arith.constant 0 : i32
    return %c0_i32, %c0_i32_0 : i32, i32
  }
  func.func @transform_3(%arg0: i32) -> (i32, i32) {
    %c0_i32 = arith.constant 0 : i32
    %c0_i32_0 = arith.constant 0 : i32
    return %arg0, %c0_i32 : i32, i32
  }
}

module attributes {stable_mosaic.version = 11 : i64} {
  func.func @_flash_attention_kernel(%arg0: i32, %arg1: i32, %arg2: i32, %arg3: memref<1x10x256xbf16, #tpu.memory_space<vmem>>, %arg4: memref<1x10x256xbf16, #tpu.memory_space<vmem>>, %arg5: memref<1x10x256xbf16, #tpu.memory_space<vmem>>, %arg6: memref<1x10x256xf32, #tpu.memory_space<vmem>>, %arg7: memref<10x1xf32, #tpu.memory_space<vmem>>, %arg8: memref<10x1xf32, #tpu.memory_space<vmem>>, %arg9: memref<10x256xf32, #tpu.memory_space<vmem>>) attributes {dimension_semantics = [#tpu.dimension_semantics<parallel>, #tpu.dimension_semantics<parallel>, #tpu.dimension_semantics<arbitrary>], iteration_bounds = array<i64: 4, 1, 1>, scalar_prefetch = 0 : i64, scratch_operands = 3 : i64, tpu.core_type = #tpu.core_type<tc>, window_params = [{transform_indices = @transform_0, window_bounds = array<i64: 1, 10, 256>}, {transform_indices = @transform_1, window_bounds = array<i64: 1, 10, 256>}, {transform_indices = @transform_2, window_bounds = array<i64: 1, 10, 256>}, {transform_indices = @transform_3, window_bounds = array<i64: 1, 10, 256>}]} {
    %c0_i32 = arith.constant 0 : i32
    %0 = arith.cmpi eq, %arg2, %c0_i32 : i32
    %1 = arith.extui %0 : i1 to i32
    %c0_i32_0 = arith.constant 0 : i32
    %2 = arith.cmpi ne, %1, %c0_i32_0 : i32
    scf.if %2 {
      %cst_26 = arith.constant 0xFF800000 : f32
      %36 = vector.broadcast %cst_26 : f32 to vector<10x1xf32>
      %c0_27 = arith.constant 0 : index
      %c0_28 = arith.constant 0 : index
      %37 = vector.load %arg7[%c0_27, %c0_28] : memref<10x1xf32, #tpu.memory_space<vmem>>, vector<10x1xf32>
      tpu.vector_store %arg7[%c0_27, %c0_28], %36 {strides = array<i32>} : memref<10x1xf32, #tpu.memory_space<vmem>>, vector<10x1xf32>,
      %cst_29 = arith.constant 0.000000e+00 : f32
      %38 = vector.broadcast %cst_29 : f32 to vector<10x1xf32>
      %c0_30 = arith.constant 0 : index
      %c0_31 = arith.constant 0 : index
      %39 = vector.load %arg8[%c0_30, %c0_31] : memref<10x1xf32, #tpu.memory_space<vmem>>, vector<10x1xf32>
      tpu.vector_store %arg8[%c0_30, %c0_31], %38 {strides = array<i32>} : memref<10x1xf32, #tpu.memory_space<vmem>>, vector<10x1xf32>,
      %cst_32 = arith.constant 0.000000e+00 : f32
      %40 = vector.broadcast %cst_32 : f32 to vector<10x256xf32>
      %c0_33 = arith.constant 0 : index
      %c0_34 = arith.constant 0 : index
      %41 = vector.load %arg9[%c0_33, %c0_34] : memref<10x256xf32, #tpu.memory_space<vmem>>, vector<10x256xf32>
      tpu.vector_store %arg9[%c0_33, %c0_34], %40 {strides = array<i32>} : memref<10x256xf32, #tpu.memory_space<vmem>>, vector<10x256xf32>,
    } else {
    }
    %c0 = arith.constant 0 : index
    %c0_1 = arith.constant 0 : index
    %c0_2 = arith.constant 0 : index
    %3 = vector.load %arg3[%c0, %c0_1, %c0_2] : memref<1x10x256xbf16, #tpu.memory_space<vmem>>, vector<1x10x256xbf16>
    %4 = vector.shape_cast %3 : vector<1x10x256xbf16> to vector<10x256xbf16>
    %c0_3 = arith.constant 0 : index
    %c0_4 = arith.constant 0 : index
    %c0_5 = arith.constant 0 : index
    %5 = vector.load %arg4[%c0_3, %c0_4, %c0_5] : memref<1x10x256xbf16, #tpu.memory_space<vmem>>, vector<1x10x256xbf16>
    %6 = vector.shape_cast %5 : vector<1x10x256xbf16> to vector<10x256xbf16>
    %c0_6 = arith.constant 0 : index
    %c0_7 = arith.constant 0 : index
    %c0_8 = arith.constant 0 : index
    %7 = vector.load %arg5[%c0_6, %c0_7, %c0_8] : memref<1x10x256xbf16, #tpu.memory_space<vmem>>, vector<1x10x256xbf16>
    %8 = vector.shape_cast %7 : vector<1x10x256xbf16> to vector<10x256xbf16>
    %cst = arith.constant dense<0.000000e+00> : vector<10x10xf32>
    %9 = tpu.matmul %4, %6, %cst {dimension_numbers = #tpu.dot_dimension_numbers<[1], [1], [0], [0], [0, 0, 1, 0], [], []>} : vector<10x256xbf16>, vector<10x256xbf16>, vector<10x10xf32> -> vector<10x10xf32>
    %c0_9 = arith.constant 0 : index
    %c0_10 = arith.constant 0 : index
    %10 = vector.load %arg7[%c0_9, %c0_10] : memref<10x1xf32, #tpu.memory_space<vmem>>, vector<10x1xf32>
    %cst_11 = arith.constant dense<0xFF800000> : vector<10xf32>
    %11 = vector.multi_reduction <maximumf>, %9, %cst_11 [1] : vector<10x10xf32> to vector<10xf32>
    %12 = vector.shape_cast %11 : vector<10xf32> to vector<10x1xf32>
    %13 = arith.maximumf %10, %12 : vector<10x1xf32>
    %14 = arith.subf %10, %13 : vector<10x1xf32>
    %15 = math.exp %14 : vector<10x1xf32>
    %16 = vector.broadcast %13 : vector<10x1xf32> to vector<10x10xf32>
    %17 = arith.subf %9, %16 : vector<10x10xf32>
    %18 = math.exp %17 : vector<10x10xf32>
    %c0_12 = arith.constant 0 : index
    %c0_13 = arith.constant 0 : index
    %19 = vector.load %arg8[%c0_12, %c0_13] : memref<10x1xf32, #tpu.memory_space<vmem>>, vector<10x1xf32>
    %20 = arith.mulf %15, %19 : vector<10x1xf32>
    %cst_14 = arith.constant dense<0.000000e+00> : vector<10xf32>
    %21 = vector.multi_reduction <add>, %18, %cst_14 [1] : vector<10x10xf32> to vector<10xf32>
    %22 = vector.shape_cast %21 : vector<10xf32> to vector<10x1xf32>
    %23 = arith.addf %20, %22 : vector<10x1xf32>
    %c0_15 = arith.constant 0 : index
    %c0_16 = arith.constant 0 : index
    %24 = vector.load %arg8[%c0_15, %c0_16] : memref<10x1xf32, #tpu.memory_space<vmem>>, vector<10x1xf32>
    tpu.vector_store %arg8[%c0_15, %c0_16], %23 {strides = array<i32>} : memref<10x1xf32, #tpu.memory_space<vmem>>, vector<10x1xf32>,
    %c0_17 = arith.constant 0 : index
    %c0_18 = arith.constant 0 : index
    %25 = vector.load %arg9[%c0_17, %c0_18] : memref<10x256xf32, #tpu.memory_space<vmem>>, vector<10x256xf32>
    %26 = vector.broadcast %15 : vector<10x1xf32> to vector<10x256xf32>
    %27 = arith.mulf %26, %25 : vector<10x256xf32>
    %28 = arith.truncf %18 : vector<10x10xf32> to vector<10x10xbf16>
    %cst_19 = arith.constant dense<0.000000e+00> : vector<10x256xf32>
    %29 = tpu.matmul %28, %8, %cst_19 {dimension_numbers = #tpu.dot_dimension_numbers<[1], [0], [0], [1], [0, 0, 1, 1], [], []>} : vector<10x10xbf16>, vector<10x256xbf16>, vector<10x256xf32> -> vector<10x256xf32>
    %30 = arith.addf %27, %29 : vector<10x256xf32>
    %c0_20 = arith.constant 0 : index
    %c0_21 = arith.constant 0 : index
    %31 = vector.load %arg9[%c0_20, %c0_21] : memref<10x256xf32, #tpu.memory_space<vmem>>, vector<10x256xf32>
    tpu.vector_store %arg9[%c0_20, %c0_21], %30 {strides = array<i32>} : memref<10x256xf32, #tpu.memory_space<vmem>>, vector<10x256xf32>,
    %c0_22 = arith.constant 0 : index
    %c0_23 = arith.constant 0 : index
    %32 = vector.load %arg7[%c0_22, %c0_23] : memref<10x1xf32, #tpu.memory_space<vmem>>, vector<10x1xf32>
    tpu.vector_store %arg7[%c0_22, %c0_23], %13 {strides = array<i32>} : memref<10x1xf32, #tpu.memory_space<vmem>>, vector<10x1xf32>,
    %c0_i32_24 = arith.constant 0 : i32
    %33 = arith.cmpi eq, %arg2, %c0_i32_24 : i32
    %34 = arith.extui %33 : i1 to i32
    %c0_i32_25 = arith.constant 0 : i32
    %35 = arith.cmpi ne, %34, %c0_i32_25 : i32
    scf.if %35 {
      %c0_26 = arith.constant 0 : index
      %c0_27 = arith.constant 0 : index
      %36 = vector.load %arg9[%c0_26, %c0_27] : memref<10x256xf32, #tpu.memory_space<vmem>>, vector<10x256xf32>
      %c0_28 = arith.constant 0 : index
      %c0_29 = arith.constant 0 : index
      %37 = vector.load %arg8[%c0_28, %c0_29] : memref<10x1xf32, #tpu.memory_space<vmem>>, vector<10x1xf32>
      %38 = vector.broadcast %37 : vector<10x1xf32> to vector<10x256xf32>
      %39 = arith.divf %36, %38 : vector<10x256xf32>
      %c0_30 = arith.constant 0 : index
      %c0_31 = arith.constant 0 : index
      %c0_32 = arith.constant 0 : index
      %40 = vector.load %arg6[%c0_30, %c0_31, %c0_32] : memref<1x10x256xf32, #tpu.memory_space<vmem>>, vector<1x10x256xf32>
      %41 = vector.shape_cast %40 : vector<1x10x256xf32> to vector<10x256xf32>
      %42 = vector.shape_cast %39 : vector<10x256xf32> to vector<1x10x256xf32>
      tpu.vector_store %arg6[%c0_30, %c0_31, %c0_32], %42 {strides = array<i32>} : memref<1x10x256xf32, #tpu.memory_space<vmem>>, vector<1x10x256xf32>,
    } else {
    }
    return
  }
  func.func @transform_0(%arg0: i32, %arg1: i32, %arg2: i32) -> (i32, i32, i32) {
    %c0_i32 = arith.constant 0 : i32
    %c0_i32_0 = arith.constant 0 : i32
    return %arg0, %arg1, %c0_i32 : i32, i32, i32
  }
  func.func @transform_1(%arg0: i32, %arg1: i32, %arg2: i32) -> (i32, i32, i32) {
    %c1_i32 = arith.constant 1 : i32
    %c0_i32 = arith.constant 0 : i32
    return %arg0, %arg2, %c1_i32 : i32, i32, i32
  }
  func.func @transform_2(%arg0: i32, %arg1: i32, %arg2: i32) -> (i32, i32, i32) {
    %c2_i32 = arith.constant 2 : i32
    %c0_i32 = arith.constant 0 : i32
    return %arg0, %arg2, %c2_i32 : i32, i32, i32
  }
  func.func @transform_3(%arg0: i32, %arg1: i32, %arg2: i32) -> (i32, i32, i32) {
    %c0_i32 = arith.constant 0 : i32
    %c0_i32_0 = arith.constant 0 : i32
    return %arg0, %arg1, %c0_i32 : i32, i32, i32
  }
}

</mosaic_0001>

<bundles_post_ra>
// kernel: self_attention.3
= control target key start
LH: loop header
LB: loop body
LE: loop exit
PB: predicated region body
PF: predicated region fallthrough
CT: control target
= control target key end

     0   :  { %s935_s12 = smov 0   ;;  %s937_s13 = smov 0   ;;  %s1039_s0 = inlined_call_operand.vmem [shape: bf16[4,10,768], index: 0, kind: input, shape index: {}, may-alias: {0,1,2}]   ;;  %s1040_s1 = inlined_call_operand.vmem [shape: bf16[4,10,768], index: 1, kind: input, shape index: {}, may-alias: {0,1,2}]   ;;  %s1041_s2 = inlined_call_operand.vmem [shape: bf16[4,10,768], index: 2, kind: input, shape index: {}, may-alias: {0,1,2}]   ;;  %s1042_s3 = inlined_call_operand.vmem [shape: f32[4,10,256], index: 3, kind: output, shape index: {}]  }
   0x1   :  { %s939_s14 = smov 0   ;;  %s941_s15 = smov 0  }
   0x2   :  { %s943_s16 = smov 0  }
   0x3 LB: > { %s32_s17 = sadd.s32 1, %s906_s15  ;;  %p48_p1 = scmp.ne.s32.totalorder %s898_s13, %s894_s12  ;;  %s910_s16 = sphi %s943_s16, %s13_s16   ;;  %s906_s15 = sphi %s941_s15, %s1047_s15   ;;  %s902_s14 = sphi %s939_s14, %s1046_s14   ;;  %s898_s13 = sphi %s937_s13, %s1045_s13   ;;  %s894_s12 = sphi %s935_s12, %s1044_s12  }
   0x4   : > { %p34_p0 = scmp.ge.s32.totalorder %s32_s17, 4  ;;  %p49_p2 = scmp.eq.s32.totalorder %s910_s16, 0 }
   0x5   : > { %s41_s20 = sadd.s32 1, %s898_s13  ;;  %p777_p5 = scmp.ge.s32.totalorder %s910_s16, 4 }
   0x6   : > { %s1049_s17 = smov (%p34_p0, %s32_s17), 0  ;;  %p966_p3 = por %p49_p2, %p48_p1 }
   0x7   : > { %s36_s19 = ssub.s32 %s906_s15, %s1049_s17  ;;  %158 = sbr.rel (%p777_p5) target bundleno = 35 (0x23), region = 16 }
   0x8   : > { %p39_p4 = scmp.eq.s32.totalorder %s36_s19, 0 }
   0xa   : > { %s974_s21 = scalar_select %p39_p4, %s898_s13, %s41_s20  }
   0xe   : > { %161 = sbr.rel (!%p966_p3) target bundleno = 21 (0x15), region = 20  ;;  %s163_s22 = sand.u32 (%p966_p3), 1, %s898_s13  }
   0xf   : > { %s805_s23 = smul.u32 (%p966_p3), 48, %s906_s15  ;;  %s778_s24 = sshll.u32 (%p966_p3), %s163_s22, 4 }
  0x10   : > { %s165_s28 = scalar_lea.vmem (%p966_p3), [#allocation5], %s778_s24 }
  0x11   : > { %s171_s27 = scalar_lea.vmem (%p966_p3), %s1039_s0, %s805_s23 }
  0x12   : > { %v201_v0 = vld [vmem:[%s171_s27] sm:$0xff] (%p966_p3)  ;;  %v203_v1 = vld [vmem:[%s171_s27 + $0x18] sm:$0xff] (%p966_p3) }
  0x13   : > { %202 = vst [vmem:[%s165_s28] sm:$0xff] (%p966_p3), %v201_v0  ;;  %204 = vst [vmem:[%s165_s28 + $0x8] sm:$0xff] (%p966_p3), %v203_v1 }
  0x15 PF: > { %210 = sbr.rel (!%p966_p3) target bundleno = 28 (0x1c), region = 58  ;;  %s212_s29 = sand.u32 (%p966_p3), 1, %s898_s13  }
  0x16   : > { %s781_s30 = smul.u32 (%p966_p3), 48, %s906_s15  ;;  %s780_s4 = sshll.u32 (%p966_p3), %s212_s29, 4 }
  0x17   : > { %s214_s8 = scalar_lea.vmem (%p966_p3), [#allocation6], %s780_s4 }
  0x18   : > { %s676_s7 = scalar_lea.vmem (%p966_p3), %s1040_s1, %s781_s30 }
  0x19   : > { %v782_v2 = vld [vmem:[%s676_s7 + $0x8] sm:$0xff] (%p966_p3)  ;;  %v783_v3 = vld [vmem:[%s676_s7 + $0x20] sm:$0xff] (%p966_p3) }
  0x1a   : > { %252 = vst [vmem:[%s214_s8] sm:$0xff] (%p966_p3), %v782_v2  ;;  %254 = vst [vmem:[%s214_s8 + $0x8] sm:$0xff] (%p966_p3), %v783_v3 }
  0x1c PF: > { %260 = sbr.rel (!%p966_p3) target bundleno = 35 (0x23), region = 96  ;;  %s262_s9 = sand.u32 (%p966_p3), 1, %s898_s13  }
  0x1d   : > { %s785_s10 = smul.u32 (%p966_p3), 48, %s906_s15  ;;  %s784_s11 = sshll.u32 (%p966_p3), %s262_s9, 4 }
  0x1e   : > { %s264_s23 = scalar_lea.vmem (%p966_p3), [#allocation7], %s784_s11 }
  0x1f   : > { %s684_s22 = scalar_lea.vmem (%p966_p3), %s1041_s2, %s785_s10 }
  0x20   : > { %v786_v4 = vld [vmem:[%s684_s22 + $0x10] sm:$0xff] (%p966_p3)  ;;  %v787_v5 = vld [vmem:[%s684_s22 + $0x28] sm:$0xff] (%p966_p3) }
  0x21   : > { %302 = vst [vmem:[%s264_s23] sm:$0xff] (%p966_p3), %v786_v4  ;;  %304 = vst [vmem:[%s264_s23 + $0x8] sm:$0xff] (%p966_p3), %v787_v5 }
  0x23 PF: > { %p788_p6 = scmp.ge.s32.totalorder %s910_s16, 1  ;;  %p309_p7 = scmp.lt.s32.totalorder %s910_s16, 5 }
  0x25   : > { %p310_p8 = pnand %p788_p6, %p309_p7 }
  0x26   : > { %s316_s18 = sand.u32 (!%p310_p8), 1, %s894_s12   ;;  %vm385_vm0 = vcmask (!%p310_p8), 7168   ;;  %v912_v10 = vmov (!%p310_p8), -inf   ;;  %vm464_vm1 = vcmask (!%p310_p8), 80896   ;;  %vm468_vm2 = vcmask (!%p310_p8), 74752   ;;  %p370_p9 = scmp.lt.s32.totalorder (!%p310_p8), %s902_s14, 3 }
  0x27   : > { %313 = sbr.rel (%p310_p8) target bundleno = 849 (0x351), region = 134  ;;  %s1001_s24 = sshll.u32 (!%p310_p8), %s316_s18, 4  ;;  %386 = vst.msk [vmem:[#allocation2] sm:$0xff] (!%p310_p8), %vm385_vm0, %v912_v10  ;;  %vm387_vm3 = vcmask (!%p310_p8), 1024   ;;  %v913_v17 = vmov (!%p310_p8), 0   ;;  %v914_v18 = vmov (!%p310_p8), 0.0  }
  0x28   : > { %s325_s25 = scalar_lea.vmem (!%p310_p8), [#allocation6], %s1001_s24  ;;  %s318_s26 = scalar_lea.vmem (!%p310_p8), [#allocation5], %s1001_s24  ;;  %388 = vst.msk [vmem:[#allocation2 + $0x8] sm:$0x3] (!%p310_p8), %vm387_vm3, %v912_v10  ;;  %849 = vset.pattern.permute.xlu1 (!%p310_p8), %v913_v17  ;;  %581 = vmatprep.mubr.bf16.mxu1 (!%p310_p8), %v913_v17  ;;  %393 = vst [vmem:[#allocation4 + $0x10] sm:$0x3] (!%p310_p8), %v914_v18 }
  0x29   : > { %v851_v6 = vld [vmem:[%s325_s25 + $0x4] ss:$8 sps:$4 sm:$0x1f] (!%p310_p8)   ;;  %v853_v7 = vld [vmem:[%s325_s25] ss:$8 sps:$4 sm:$0x1f] (!%p310_p8)   ;;  %850 = vset.pattern.permute.xlu0 (!%p310_p8), %v913_v17 }
  0x2a   : > { %421 = vmatprep.subr.bf16.mxu0 (!%p310_p8), %v851_v6  ;;  %v856_v8 = vld [vmem:[%s318_s26 + $0x4] ss:$8 sps:$4 sm:$0x1f] (!%p310_p8)   ;;  %v854_v9 = vld [vmem:[%s318_s26] ss:$8 sps:$4 sm:$0x1f] (!%p310_p8)  }
  0x2b   : > { %422 = vmatpush1.bf16.xpose.msra.mxu0 (!%p310_p8), %v853_v7  ;;  %453 = vmatprep.mubr.bf16.mxu0 (!%p310_p8), %v856_v8  ;;  %389 = vst.msk [vmem:[#allocation3] sm:$0xff] (!%p310_p8), %vm385_vm0, %v914_v18  ;;  %394 = vst [vmem:[#allocation4 + $0x18] sm:$0x3] (!%p310_p8), %v914_v18  ;;  %s332_s12 = scalar_lea.vmem (!%p310_p8), [#allocation7], %s1001_s24  ;;  %vm542_vm4 = vcmask (!%p310_p8), 1044480  }
  0x2c   : > { %390 = vst.msk [vmem:[#allocation3 + $0x8] sm:$0x3] (!%p310_p8), %vm387_vm3, %v914_v18  ;;  %v857_v27 = vld [vmem:[%s332_s12 + $0x4] ss:$8 sps:$4 sm:$0x1f] (!%p310_p8)  }
  0x2d   : > { %v859_v28 = vld [vmem:[%s332_s12] ss:$8 sps:$4 sm:$0x1f] (!%p310_p8)   ;;  %800 = vmatprep.subr.msk.bf16.mxu1 (!%p310_p8), %vm542_vm4, %v857_v27 }
  0x2e   : > { %v462_v19 = vld [vmem:[#allocation2] sm:$0xff]  ;;  %v544_v29 = vsel %vm542_vm4, %v859_v28, 0  ;;  %s1051_s14 = smov (!%p370_p9, %s902_s14), 3 }
  0x2f   : > { %v463_v22 = vld [vmem:[#allocation2 + $0x8] sm:$0x3]  ;;  %550 = vmatpush1.bf16.msra.mxu1 %v544_v29  ;;  %v514_v56 = vld [vmem:[#allocation4 + $0x10] sm:$0x3]  ;;  %s804_s27 = sshll.u32 %s1051_s14, 5 }
  0x30   : > { %s378_s30 = scalar_lea.vmem %s1042_s3, %s804_s27 }
  0x32   : > { %454 = vmatmul.mubr.bf16.vlgmr.msra.gmra.mrb[0].mxu0 %v854_v9  ;;  %v496_v45 = vld [vmem:[#allocation3] sm:$0xff]  ;;  %v515_v58 = vld [vmem:[#allocation4 + $0x18] sm:$0x3] }
  0x33   : > { %v497_v48 = vld [vmem:[#allocation3 + $0x8] sm:$0x3] }
 0x105   : > { %v455_v11 = vpop.f32.mrb[0].mxu0 }
 0x106   : > { %v457_v12 = vpop.f32.mrb[1].mxu0  ;;  %v465_v13 = vsel %vm464_vm1, %v455_v11, -inf }
 0x107   : > { %466 = vmax.xlane.f32.xlu0 %v465_v13  ;;  %v458_v14 = vpop.f32.mrb[2].mxu0 }
 0x108   : > { %v460_v15 = vpop.f32.mrb[3].mxu0  ;;  %v469_v16 = vsel %vm468_vm2, %v458_v14, -inf }
 0x10b   : > { %470 = vmax.xlane.f32.xlu0 %v469_v16 }
 0x194   : > { %v467_v20 = vpop.xlane.xlu0 %466 }
 0x195   : > { %v472_v21 = vmax.f32 %v462_v19, %v467_v20 }
 0x197   : > { %v474_v23 = vsub.f32 %v462_v19, %v472_v21  ;;  %600 = vst.msk [vmem:[#allocation2] sm:$0xff] %vm385_vm0, %v472_v21  ;;  %482 = vperm.xlu1 %849, %v472_v21  }
 0x198   : > { %v471_v24 = vpop.xlane.xlu0 %470 }
 0x199   : > { %v473_v25 = vmax.f32 %v463_v22, %v471_v24  ;;  %v476_v42 = vmul.f32 1.442695, %v474_v23 }
 0x19b   : > { %v475_v26 = vsub.f32 %v463_v22, %v473_v25  ;;  %601 = vst.msk [vmem:[#allocation2 + $0x8] sm:$0x3] %vm387_vm3, %v473_v25  ;;  %487 = vperm.xlu1 %849, %v473_v25  }
 0x19d   : > { %v478_v41 = vmul.f32 1.442695, %v475_v26 }
 0x216   : > { %v483_v30 = vpop.permute.xlu1 %482 }
 0x217   : > { %v490_v31 = vsub.f32 %v455_v11, %v483_v30 }
 0x219   : > { %v492_v32 = vmul.f32 1.442695, %v490_v31 }
 0x21a   : > { %v488_v33 = vpop.permute.xlu1 %487 }
 0x21b   : > { %860 = vpow2.f32 %v492_v32  ;;  %v491_v34 = vsub.f32 %v458_v14, %v488_v33 }
 0x21d   : > { %v494_v35 = vmul.f32 1.442695, %v491_v34 }
 0x21f   : > { %862 = vpow2.f32 %v494_v35 }
 0x220   : > { %864 = vpow2.f32 %v478_v41 }
 0x221   : > { %866 = vpow2.f32 %v476_v42 }
 0x225   : > { %v861_v36 = vpop.eup %860 }
 0x226   : > { %v500_v37 = vsel %vm464_vm1, %v861_v36, 0.0 }
 0x227   : > { %501 = vadd.xlane.f32.xlu0 %v500_v37 }
 0x229   : > { %v863_v38 = vpop.eup %862 }
 0x22a   : > { %v503_v39 = vsel %vm468_vm2, %v863_v38, 0.0  ;;  %v530_v40 = vpack.c.bf16 %v863_v38, %v861_v36  ;;  %v865_v43 = vpop.eup %864 }
 0x22b   : > { %504 = vadd.xlane.f32.xlu1 %v503_v39  ;;  %v867_v44 = vpop.eup %866  ;;  %v499_v50 = vmul.f32 %v865_v43, %v497_v48 }
 0x22c   : > { %801 = vmatmul.mubr.msk.bf16.vlgmr.msra.gmra.mrb[0].mxu1 %vm464_vm1, %v530_v40  ;;  %v498_v46 = vmul.f32 %v867_v44, %v496_v45 }
 0x23c   : > { %523 = vperm.xlu1 %849, %v865_v43  }
 0x23d   : > { %518 = vperm.xlu0 %850, %v867_v44  }
 0x2b4   : > { %v502_v47 = vpop.xlane.xlu0 %501 }
 0x2b5   : > { %v506_v49 = vadd.f32 %v502_v47, %v498_v46 }
 0x2b7   : > { %509 = vst.msk [vmem:[#allocation3] sm:$0xff] %vm385_vm0, %v506_v49 }
 0x2b8   : > { %v505_v51 = vpop.xlane.xlu1 %504 }
 0x2b9   : > { %v507_v52 = vadd.f32 %v505_v51, %v499_v50 }
 0x2bb   : > { %511 = vst.msk [vmem:[#allocation3 + $0x8] sm:$0x3] %vm387_vm3, %v507_v52 }
 0x2bc   : > { %v519_v55 = vpop.permute.xlu0 %518  ;;  %v524_v57 = vpop.permute.xlu1 %523 }
 0x2bd   : > { %v526_v59 = vmul.f32 0.0, %v519_v55  ;;  %v528_v61 = vmul.f32 %v524_v57, %v514_v56  ;;  %v529_v0 = vmul.f32 %v524_v57, %v515_v58 }
 0x2be   : > { %v609_v53 = vld [vmem:[#allocation3] sm:$0xff] }
 0x2bf   : > { %613 = vperm.xlu0 %850, %v609_v53  }
 0x2c2   : > { %v610_v54 = vld [vmem:[#allocation3 + $0x8] sm:$0x3] }
 0x2c3   : > { %618 = vperm.xlu0 %850, %v610_v54  }
 0x2ff   : > { %v583_v60 = vpop.f32.mrb[0].mxu1 }
 0x300   : > { %v592_v62 = vadd.f32 %v583_v60, %v526_v59  ;;  %v585_v63 = vpop.f32.mrb[1].mxu1 }
 0x301   : > { %v593_v1 = vadd.f32 %v585_v63, %v526_v59  ;;  %v587_v2 = vpop.f32.mrb[2].mxu1 }
 0x302   : > { %v594_v3 = vadd.f32 %v587_v2, %v528_v61  ;;  %v589_v4 = vpop.f32.mrb[3].mxu1 }
 0x303   : > { %v595_v5 = vadd.f32 %v589_v4, %v529_v0 }
 0x304   : > { %598 = vst [vmem:[#allocation4 + $0x10] sm:$0x3] %v594_v3 }
 0x305   : > { %599 = vst [vmem:[#allocation4 + $0x18] sm:$0x3] %v595_v5 }
 0x30b   : > { %v607_v12 = vld [vmem:[#allocation4 + $0x10] sm:$0x3] }
 0x30c   : > { %v608_v13 = vld [vmem:[#allocation4 + $0x18] sm:$0x3] }
 0x33e   : > { %v614_v6 = vpop.permute.xlu0 %613 }
 0x33f   : > { %868 = vrcp.f32 %v614_v6 }
 0x342   : > { %v619_v7 = vpop.permute.xlu0 %618 }
 0x343   : > { %870 = vrcp.f32 %v619_v7 }
 0x349   : > { %v869_v8 = vpop.eup %868 }
 0x34a   : > { %v622_v9 = vmul.f32 %v869_v8, %v592_v62  ;;  %v623_v10 = vmul.f32 %v869_v8, %v593_v1 }
 0x34c   : > { %627 = vst [vmem:[%s378_s30] sm:$0xff] %v622_v9  ;;  %628 = vst [vmem:[%s378_s30 + $0x8] sm:$0xff] %v623_v10 }
 0x34d   : > { %v871_v11 = vpop.eup %870 }
 0x34e   : > { %v625_v14 = vmul.f32 %v871_v11, %v607_v12  ;;  %v626_v15 = vmul.f32 %v871_v11, %v608_v13 }
 0x350   : > { %629 = vst [vmem:[%s378_s30 + $0x10] sm:$0x3] %v625_v14  ;;  %630 = vst [vmem:[%s378_s30 + $0x18] sm:$0x3] %v626_v15 }
 0x351 PF: > { %s13_s16 = sadd.s32 1, %s910_s16   ;;  %s1044_s12 = smov %s898_s13 }
 0x352   : > { %p10_p10 = scmp.ge.s32.totalorder %s13_s16, 6   ;;  %s1045_s13 = smov %s974_s21 }
 0x353   : > { %s1046_s14 = smov %s906_s15  ;;  %s1047_s15 = smov %s1049_s17 }
 0x354   :  { %12 = sbr.rel (!%p10_p10) target bundleno = 3 (0x3), region = 205 }

// kernel: self_attention.2
= control target key start
LH: loop header
LB: loop body
LE: loop exit
PB: predicated region body
PF: predicated region fallthrough
CT: control target
= control target key end

     0   :  { %8 = vsyncpa [#allocation3], 0  ;;  %s1310_s12 = smov [#allocation2]   ;;  %s1447_s0 = inlined_call_operand.vmem [shape: bf16[40,256], index: 0, kind: input, shape index: {}]   ;;  %s1448_s1 = inlined_call_operand.hbm [shape: bf16[256,768], index: 1, kind: input, shape index: {}]   ;;  %s1449_s2 = inlined_call_operand.vmem [shape: f32[1,768], index: 2, kind: input, shape index: {}]   ;;  %s1450_s3 = inlined_call_operand.vmem [shape: bf16[40,768], index: 3, kind: output, shape index: {}]  }
   0x1   :  { %s16_s13 = sshll.u32 %s1310_s12, 4  ;;  %s1286_s16 = scalar_lea.hbm %s1448_s1, 12288  ;;  %s17_s13 = int_to_ptr.vmem [resolvable:$true] %s16_s13 }
   0x2   :  { %p1287_p0 = scmp.ne.s32.totalorder %s1448_s1, %s1286_s16  ;;  %p1290_p1 = scmp.lt.u32.totalorder %s1286_s16, %s1448_s1 }
   0x4   :  { %p1292_p2 = pnand %p1290_p1, %p1287_p0 }
   0x6   :  { %1295 = shalt.err (!%p1292_p2)
}
   0x7   :  { %s1296_s21 = scalar_lea.vmem %s17_s13, 12288  ;;  %p1301_p4 = scmp.lt.s32.totalorder %s17_s13, %s17_s13 }
   0x8   :  { %p1297_p3 = scmp.ne.s32.totalorder %s17_s13, %s1296_s21  ;;  %p1302_p5 = scmp.lt.s32.totalorder %s1296_s21, %s1296_s21 }
   0xa   :  { %p1303_p6 = por %p1302_p5, %p1301_p4 }
   0xc   :  { %p1304_p7 = pnand %p1303_p6, %p1297_p3 }
   0xe   :  { %1307 = shalt.err (!%p1304_p7)
}
   0xf   :  { %s1311_s22 = smov 384   ;;  %s1312_s23 = smov 24  }
  0x10   :  { %22 = dma.hbm_to_vmem [thread:$0]  %s1448_s1, 12288, %s17_s13, [#allocation3], %s1311_s22, %s1311_s22, %s1312_s23  }
  0x11   :  { %1308 = dma.done.wait [#allocation3], 12288  }
  0x12   :  { %1309 = vsyncadd [#allocation3], 4294955008  ;;  %v1134_v0 = vld [vmem:[#allocation2 + $0xc] ss:$24 sps:$4 sm:$0xff]   ;;  %v1136_v1 = vld [vmem:[#allocation2 + $0x8] ss:$24 sps:$4 sm:$0xff]  }
  0x13   :  { %729 = vmatprep.subr.bf16.mxu1 %v1134_v0  ;;  %v1137_v2 = vld [vmem:[#allocation2 + $0x4] ss:$24 sps:$4 sm:$0xff]   ;;  %v1139_v3 = vld [vmem:[#allocation2] ss:$24 sps:$4 sm:$0xff]   ;;  %v1143_v6 = vld [vmem:[#allocation2 + $0x34] ss:$24 sps:$4 sm:$0xff]  }
  0x14   :  { %730 = vmatpush1.bf16.msra.mxu1 %v1136_v1  ;;  %v1140_v4 = vld [vmem:[#allocation2 + $0x3c] ss:$24 sps:$4 sm:$0xff]   ;;  %v1142_v5 = vld [vmem:[#allocation2 + $0x38] ss:$24 sps:$4 sm:$0xff]   ;;  %668 = vmatprep.subr.bf16.mxu0 %v1137_v2  ;;  %v1146_v8 = vld [vmem:[#allocation2 + $0x6c] ss:$24 sps:$4 sm:$0xff]  }
  0x15   :  { %669 = vmatpush1.bf16.msra.mxu0 %v1139_v3  ;;  %731 = vmatprep.subr.bf16.mxu1 %v1140_v4  ;;  %v1145_v7 = vld [vmem:[#allocation2 + $0x30] ss:$24 sps:$4 sm:$0xff]   ;;  %v1149_v10 = vld [vmem:[#allocation2 + $0x64] ss:$24 sps:$4 sm:$0xff]   ;;  %v1151_v12 = vld [vmem:[#allocation2 + $0x60] ss:$24 sps:$4 sm:$0xff]  }
  0x16   :  { %670 = vmatprep.subr.bf16.mxu0 %v1143_v6  ;;  %v1148_v9 = vld [vmem:[#allocation2 + $0x68] ss:$24 sps:$4 sm:$0xff]   ;;  %v1152_v11 = vld [vmem:[#allocation2 + $0x9c] ss:$24 sps:$4 sm:$0xff]   ;;  %v1154_v14 = vld [vmem:[#allocation2 + $0x98] ss:$24 sps:$4 sm:$0xff]  }
  0x17   :  { %v1155_v13 = vld [vmem:[#allocation2 + $0x94] ss:$24 sps:$4 sm:$0xff]   ;;  %v1157_v16 = vld [vmem:[#allocation2 + $0x90] ss:$24 sps:$4 sm:$0xff]   ;;  %v1161_v17 = vld [vmem:[#allocation2 + $0xc4] ss:$24 sps:$4 sm:$0xff]  }
  0x18   :  { %732 = vmatpush1.bf16.msra.mxu1 %v1142_v5  ;;  %v1158_v15 = vld [vmem:[#allocation2 + $0xcc] ss:$24 sps:$4 sm:$0xff]   ;;  %v1160_v18 = vld [vmem:[#allocation2 + $0xc8] ss:$24 sps:$4 sm:$0xff]   ;;  %v1164_v19 = vld [vmem:[#allocation2 + $0xfc] ss:$24 sps:$4 sm:$0xff]  }
  0x19   :  { %733 = vmatprep.subr.bf16.mxu1 %v1146_v8  ;;  %671 = vmatpush1.bf16.msra.mxu0 %v1145_v7  ;;  %v1163_v20 = vld [vmem:[#allocation2 + $0xc0] ss:$24 sps:$4 sm:$0xff]   ;;  %v1167_v21 = vld [vmem:[#allocation2 + $0xf4] ss:$24 sps:$4 sm:$0xff]   ;;  %v1169_v24 = vld [vmem:[#allocation2 + $0xf0] ss:$24 sps:$4 sm:$0xff]  }
  0x1a   :  { %672 = vmatprep.subr.bf16.mxu0 %v1149_v10  ;;  %v1166_v22 = vld [vmem:[#allocation2 + $0xf8] ss:$24 sps:$4 sm:$0xff]   ;;  %v1170_v23 = vld [vmem:[#allocation2 + $0x12c] ss:$24 sps:$4 sm:$0xff]   ;;  %v1172_v26 = vld [vmem:[#allocation2 + $0x128] ss:$24 sps:$4 sm:$0xff]  }
  0x1b   :  { %v1173_v25 = vld [vmem:[#allocation2 + $0x124] ss:$24 sps:$4 sm:$0xff]   ;;  %v1175_v28 = vld [vmem:[#allocation2 + $0x120] ss:$24 sps:$4 sm:$0xff]   ;;  %v1179_v29 = vld [vmem:[#allocation2 + $0x154] ss:$24 sps:$4 sm:$0xff]  }
  0x1c   :  { %734 = vmatpush1.bf16.msra.mxu1 %v1148_v9  ;;  %v1176_v27 = vld [vmem:[#allocation2 + $0x15c] ss:$24 sps:$4 sm:$0xff]   ;;  %v1178_v30 = vld [vmem:[#allocation2 + $0x158] ss:$24 sps:$4 sm:$0xff]   ;;  %v1182_v31 = vld [vmem:[#allocation2 + $0x18c] ss:$24 sps:$4 sm:$0xff]  }
  0x1d   :  { %735 = vmatprep.subr.bf16.mxu1 %v1152_v11  ;;  %673 = vmatpush1.bf16.msra.mxu0 %v1151_v12  ;;  %v1181_v32 = vld [vmem:[#allocation2 + $0x150] ss:$24 sps:$4 sm:$0xff]   ;;  %v1185_v33 = vld [vmem:[#allocation2 + $0x184] ss:$24 sps:$4 sm:$0xff]   ;;  %v1187_v36 = vld [vmem:[#allocation2 + $0x180] ss:$24 sps:$4 sm:$0xff]  }
  0x1e   :  { %674 = vmatprep.subr.bf16.mxu0 %v1155_v13  ;;  %v1184_v34 = vld [vmem:[#allocation2 + $0x188] ss:$24 sps:$4 sm:$0xff]   ;;  %v1188_v35 = vld [vmem:[#allocation2 + $0x1bc] ss:$24 sps:$4 sm:$0xff]   ;;  %v1190_v38 = vld [vmem:[#allocation2 + $0x1b8] ss:$24 sps:$4 sm:$0xff]  }
  0x1f   :  { %v1191_v37 = vld [vmem:[#allocation2 + $0x1b4] ss:$24 sps:$4 sm:$0xff]   ;;  %v1193_v40 = vld [vmem:[#allocation2 + $0x1b0] ss:$24 sps:$4 sm:$0xff]   ;;  %v1197_v41 = vld [vmem:[#allocation2 + $0x1e4] ss:$24 sps:$4 sm:$0xff]  }
  0x20   :  { %736 = vmatpush1.bf16.msra.mxu1 %v1154_v14  ;;  %v1194_v39 = vld [vmem:[#allocation2 + $0x1ec] ss:$24 sps:$4 sm:$0xff]   ;;  %v1196_v42 = vld [vmem:[#allocation2 + $0x1e8] ss:$24 sps:$4 sm:$0xff]   ;;  %v1200_v43 = vld [vmem:[#allocation2 + $0x21c] ss:$24 sps:$4 sm:$0xff]  }
  0x21   :  { %737 = vmatprep.subr.bf16.mxu1 %v1158_v15  ;;  %675 = vmatpush1.bf16.msra.mxu0 %v1157_v16  ;;  %v1199_v44 = vld [vmem:[#allocation2 + $0x1e0] ss:$24 sps:$4 sm:$0xff]   ;;  %v1203_v45 = vld [vmem:[#allocation2 + $0x214] ss:$24 sps:$4 sm:$0xff]   ;;  %v1205_v49 = vld [vmem:[#allocation2 + $0x210] ss:$24 sps:$4 sm:$0xff]  }
  0x22   :  { %676 = vmatprep.subr.bf16.mxu0 %v1161_v17  ;;  %v1202_v46 = vld [vmem:[#allocation2 + $0x218] ss:$24 sps:$4 sm:$0xff]   ;;  %v1348_v47 = vld [vmem:[%s1447_s0 + $0x4] ss:$8 sps:$4 sm:$0xff]   ;;  %v1208_v51 = vld [vmem:[#allocation2 + $0x248] ss:$24 sps:$4 sm:$0xff]  }
  0x23   :  { %v1206_v48 = vld [vmem:[#allocation2 + $0x24c] ss:$24 sps:$4 sm:$0xff]   ;;  %761 = vmatprep.mubr.bf16.mxu1 %v1348_v47  ;;  %700 = vmatprep.mubr.bf16.mxu0 %v1348_v47  ;;  %v1212_v52 = vld [vmem:[#allocation2 + $0x27c] ss:$24 sps:$4 sm:$0xff]   ;;  %v1211_v53 = vld [vmem:[#allocation2 + $0x240] ss:$24 sps:$4 sm:$0xff]  }
  0x24   :  { %738 = vmatpush1.bf16.msra.mxu1 %v1160_v18  ;;  %v1209_v50 = vld [vmem:[#allocation2 + $0x244] ss:$24 sps:$4 sm:$0xff]   ;;  %v1215_v54 = vld [vmem:[#allocation2 + $0x274] ss:$24 sps:$4 sm:$0xff]   ;;  %v1214_v55 = vld [vmem:[#allocation2 + $0x278] ss:$24 sps:$4 sm:$0xff]  }
  0x25   :  { %739 = vmatprep.subr.bf16.mxu1 %v1164_v19  ;;  %677 = vmatpush1.bf16.msra.mxu0 %v1163_v20  ;;  %v1218_v56 = vld [vmem:[#allocation2 + $0x2ac] ss:$24 sps:$4 sm:$0xff]   ;;  %v1217_v57 = vld [vmem:[#allocation2 + $0x270] ss:$24 sps:$4 sm:$0xff]   ;;  %v1224_v60 = vld [vmem:[#allocation2 + $0x2dc] ss:$24 sps:$4 sm:$0xff]  }
  0x26   :  { %678 = vmatprep.subr.bf16.mxu0 %v1167_v21  ;;  %v1221_v58 = vld [vmem:[#allocation2 + $0x2a4] ss:$24 sps:$4 sm:$0xff]   ;;  %v1220_v59 = vld [vmem:[#allocation2 + $0x2a8] ss:$24 sps:$4 sm:$0xff]   ;;  %v1227_v62 = vld [vmem:[#allocation2 + $0x2d4] ss:$24 sps:$4 sm:$0xff]  }
  0x27   :  { %v1223_v61 = vld [vmem:[#allocation2 + $0x2a0] ss:$24 sps:$4 sm:$0xff]   ;;  %v1235_v0 = vld [vmem:[#allocation2 + $0x14] ss:$24 sps:$4 sm:$0xff]   ;;  %v1231_v1 = vld [vmem:[#allocation2 + $0x2d0] ss:$24 sps:$4 sm:$0xff]  }
  0x28   :  { %740 = vmatpush1.bf16.msra.mxu1 %v1166_v22  ;;  %v1226_v63 = vld [vmem:[#allocation2 + $0x2d8] ss:$24 sps:$4 sm:$0xff]   ;;  %v1355_v2 = vld [vmem:[%s1447_s0] ss:$8 sps:$4 sm:$0xff]   ;;  %v1266_v4 = vld [vmem:[%s1447_s0 + $0x14] ss:$8 sps:$4 sm:$0xff]  }
  0x29   :  { %741 = vmatprep.subr.bf16.mxu1 %v1170_v23  ;;  %679 = vmatpush1.bf16.msra.mxu0 %v1169_v24  ;;  %v1233_v3 = vld [vmem:[#allocation2 + $0x10] ss:$24 sps:$4 sm:$0xff]   ;;  %v1238_v5 = vld [vmem:[#allocation2 + $0x44] ss:$24 sps:$4 sm:$0xff]   ;;  %v1236_v6 = vld [vmem:[#allocation2 + $0x40] ss:$24 sps:$4 sm:$0xff]  }
  0x2a   :  { %680 = vmatprep.subr.bf16.mxu0 %v1173_v25  ;;  %v1241_v7 = vld [vmem:[#allocation2 + $0x74] ss:$24 sps:$4 sm:$0xff]   ;;  %v32_v8 = vld [vmem:[%s1447_s0 + $0x20] sm:$0xff]  ;;  %v1368_v9 = vld [vmem:[%s1447_s0 + $0x10] ss:$8 sps:$4 sm:$0xff]  }
  0x2b   :  { %v1239_v10 = vld [vmem:[#allocation2 + $0x70] ss:$24 sps:$4 sm:$0xff]   ;;  %v1370_v11 = vcombine.high %v32_v8, %v32_v8  ;;  %v1244_v12 = vld [vmem:[#allocation2 + $0xa4] ss:$24 sps:$4 sm:$0xff]   ;;  %v1242_v13 = vld [vmem:[#allocation2 + $0xa0] ss:$24 sps:$4 sm:$0xff]   ;;  %v1376_v15 = vcombine.low %v32_v8, %v32_v8 }
  0x2c   :  { %742 = vmatpush1.bf16.msra.mxu1 %v1172_v26  ;;  %v1247_v14 = vld [vmem:[#allocation2 + $0xd4] ss:$24 sps:$4 sm:$0xff]   ;;  %v1245_v16 = vld [vmem:[#allocation2 + $0xd0] ss:$24 sps:$4 sm:$0xff]   ;;  %v1250_v17 = vld [vmem:[#allocation2 + $0x104] ss:$24 sps:$4 sm:$0xff]  }
  0x2d   :  { %743 = vmatprep.subr.bf16.mxu1 %v1176_v27  ;;  %681 = vmatpush1.bf16.msra.mxu0 %v1175_v28  ;;  %v1248_v18 = vld [vmem:[#allocation2 + $0x100] ss:$24 sps:$4 sm:$0xff]   ;;  %v1253_v19 = vld [vmem:[#allocation2 + $0x134] ss:$24 sps:$4 sm:$0xff]   ;;  %v1251_v20 = vld [vmem:[#allocation2 + $0x130] ss:$24 sps:$4 sm:$0xff]  }
  0x2e   :  { %682 = vmatprep.subr.bf16.mxu0 %v1179_v29  ;;  %v1256_v21 = vld [vmem:[#allocation2 + $0x164] ss:$24 sps:$4 sm:$0xff]   ;;  %v1254_v22 = vld [vmem:[#allocation2 + $0x160] ss:$24 sps:$4 sm:$0xff]   ;;  %v1259_v23 = vld [vmem:[#allocation2 + $0x194] ss:$24 sps:$4 sm:$0xff]  }
  0x2f   :  { %v1257_v24 = vld [vmem:[#allocation2 + $0x190] ss:$24 sps:$4 sm:$0xff]   ;;  %v1262_v25 = vld [vmem:[#allocation2 + $0x1c4] ss:$24 sps:$4 sm:$0xff]   ;;  %v1260_v26 = vld [vmem:[#allocation2 + $0x1c0] ss:$24 sps:$4 sm:$0xff]  }
  0x30   :  { %744 = vmatpush1.bf16.msra.mxu1 %v1178_v30  ;;  %v1265_v27 = vld [vmem:[#allocation2 + $0x1f4] ss:$24 sps:$4 sm:$0xff]   ;;  %v1263_v28 = vld [vmem:[#allocation2 + $0x1f0] ss:$24 sps:$4 sm:$0xff]   ;;  %v1270_v29 = vld [vmem:[#allocation2 + $0x224] ss:$24 sps:$4 sm:$0xff]  }
  0x31   :  { %745 = vmatprep.subr.bf16.mxu1 %v1182_v31  ;;  %683 = vmatpush1.bf16.msra.mxu0 %v1181_v32  ;;  %v1268_v30 = vld [vmem:[#allocation2 + $0x220] ss:$24 sps:$4 sm:$0xff]   ;;  %v1274_v31 = vld [vmem:[#allocation2 + $0x254] ss:$24 sps:$4 sm:$0xff]   ;;  %v1272_v32 = vld [vmem:[#allocation2 + $0x250] ss:$24 sps:$4 sm:$0xff]  }
  0x32   :  { %684 = vmatprep.subr.bf16.mxu0 %v1185_v33  ;;  %v1278_v33 = vld [vmem:[#allocation2 + $0x284] ss:$24 sps:$4 sm:$0xff]  }
  0x34   :  { %746 = vmatpush1.bf16.msra.mxu1 %v1184_v34  ;;  %v1276_v34 = vld [vmem:[#allocation2 + $0x280] ss:$24 sps:$4 sm:$0xff]  }
  0x35   :  { %747 = vmatprep.subr.bf16.mxu1 %v1188_v35  ;;  %685 = vmatpush1.bf16.msra.mxu0 %v1187_v36  ;;  %v1282_v35 = vld [vmem:[#allocation2 + $0x2b4] ss:$24 sps:$4 sm:$0xff]   ;;  %v1280_v36 = vld [vmem:[#allocation2 + $0x2b0] ss:$24 sps:$4 sm:$0xff]  }
  0x36   :  { %686 = vmatprep.subr.bf16.mxu0 %v1191_v37  ;;  %v1285_v37 = vld [vmem:[#allocation2 + $0x2e4] ss:$24 sps:$4 sm:$0xff]  }
  0x38   :  { %748 = vmatpush1.bf16.msra.mxu1 %v1190_v38  ;;  %v1283_v38 = vld [vmem:[#allocation2 + $0x2e0] ss:$24 sps:$4 sm:$0xff]  }
  0x39   :  { %749 = vmatprep.subr.bf16.mxu1 %v1194_v39  ;;  %687 = vmatpush1.bf16.msra.mxu0 %v1193_v40  ;;  %v131_v39 = vlaneseq }
  0x3a   :  { %688 = vmatprep.subr.bf16.mxu0 %v1197_v41 }
  0x3b   :  { %v132_v40 = vshrl.u32 %v131_v39, 7 }
  0x3c   :  { %750 = vmatpush1.bf16.msra.mxu1 %v1196_v42  ;;  %v129_v42 = vld [vmem:[%s1449_s2] sm:$0x3f] }
  0x3d   :  { %751 = vmatprep.subr.bf16.mxu1 %v1200_v43  ;;  %689 = vmatpush1.bf16.msra.mxu0 %v1199_v44  ;;  %v149_v41 = vsub.s32 4, %v132_v40  ;;  %v153_v44 = vsub.s32 5, %v132_v40 }
  0x3e   :  { %690 = vmatprep.subr.bf16.mxu0 %v1203_v45 }
  0x3f   :  { %v1388_v43 = vrot.slane %v129_v42, %v149_v41  ;;  %v1390_v45 = vrot.slane %v129_v42, %v153_v44 }
  0x40   :  { %752 = vmatpush1.bf16.msra.mxu1 %v1202_v46  ;;  %v141_v46 = vsub.s32 2, %v132_v40 }
  0x41   :  { %753 = vmatprep.subr.bf16.mxu1 %v1206_v48  ;;  %691 = vmatpush1.bf16.msra.mxu0 %v1205_v49  ;;  %v133_v48 = vsub.s32 0, %v132_v40  ;;  %v137_v49 = vsub.s32 1, %v132_v40 }
  0x42   :  { %692 = vmatprep.subr.bf16.mxu0 %v1209_v50  ;;  %v142_v50 = vrot.slane %v129_v42, %v141_v46 }
  0x44   :  { %754 = vmatpush1.bf16.msra.mxu1 %v1208_v51 }
  0x45   :  { %755 = vmatprep.subr.bf16.mxu1 %v1212_v52  ;;  %693 = vmatpush1.bf16.msra.mxu0 %v1211_v53  ;;  %v134_v52 = vrot.slane %v129_v42, %v133_v48 }
  0x46   :  { %694 = vmatprep.subr.bf16.mxu0 %v1215_v54  ;;  %v138_v54 = vrot.slane %v129_v42, %v137_v49 }
  0x48   :  { %756 = vmatpush1.bf16.msra.mxu1 %v1214_v55 }
  0x49   :  { %757 = vmatprep.subr.bf16.mxu1 %v1218_v56  ;;  %695 = vmatpush1.bf16.msra.mxu0 %v1217_v57 }
  0x4a   :  { %696 = vmatprep.subr.bf16.mxu0 %v1221_v58 }
  0x4c   :  { %758 = vmatpush1.bf16.msra.mxu1 %v1220_v59 }
  0x4d   :  { %759 = vmatprep.subr.bf16.mxu1 %v1224_v60  ;;  %697 = vmatpush1.bf16.msra.mxu0 %v1223_v61 }
  0x4e   :  { %698 = vmatprep.subr.bf16.mxu0 %v1227_v62 }
  0x50   :  { %760 = vmatpush1.bf16.msra.mxu1 %v1226_v63 }
  0x51   :  { %1099 = vmatprep.subr.bf16.mxu1 %v1235_v0  ;;  %699 = vmatpush1.bf16.msra.mxu0 %v1231_v1 }
  0x52   :  { %790 = vmatprep.subr.bf16.mxu0 %v1235_v0 }
  0x53   :  { %762 = vmatmul.mubr.bf16.vlgmr.msra.gmra.mrb[0].mxu1 %v1355_v2 }
  0x54   :  { %1115 = vmatpush1.bf16.msra.mxu1 %v1233_v3  ;;  %771 = vmatprep.mubr.bf16.mxu1 %v1266_v4 }
  0x55   :  { %701 = vmatmul.mubr.bf16.vlgmr.msra.gmra.mrb[0].mxu0 %v1355_v2  ;;  %1100 = vmatprep.subr.bf16.mxu1 %v1238_v5 }
  0x56   :  { %791 = vmatpush1.bf16.msra.mxu0 %v1233_v3  ;;  %710 = vmatprep.mubr.bf16.mxu0 %v1266_v4 }
  0x57   :  { %792 = vmatprep.subr.bf16.mxu0 %v1238_v5 }
  0x58   :  { %1116 = vmatpush1.bf16.msra.mxu1 %v1236_v6 }
  0x59   :  { %1101 = vmatprep.subr.bf16.mxu1 %v1241_v7 }
  0x5a   :  { %793 = vmatpush1.bf16.msra.mxu0 %v1236_v6 }
  0x5b   :  { %794 = vmatprep.subr.bf16.mxu0 %v1241_v7  ;;  %772 = vmatmul.mubr.bf16.gmra.mrb[4].mxu1 %v1368_v9 }
  0x5c   :  { %1117 = vmatpush1.bf16.msra.mxu1 %v1239_v10  ;;  %781 = vmatprep.mubr.bf16.mxu1 %v1370_v11 }
  0x5d   :  { %1102 = vmatprep.subr.bf16.mxu1 %v1244_v12  ;;  %711 = vmatmul.mubr.bf16.gmra.mrb[4].mxu0 %v1368_v9 }
  0x5e   :  { %795 = vmatpush1.bf16.msra.mxu0 %v1239_v10  ;;  %720 = vmatprep.mubr.bf16.mxu0 %v1370_v11 }
  0x5f   :  { %796 = vmatprep.subr.bf16.mxu0 %v1244_v12 }
  0x60   :  { %1118 = vmatpush1.bf16.msra.mxu1 %v1242_v13 }
  0x61   :  { %1103 = vmatprep.subr.bf16.mxu1 %v1247_v14 }
  0x62   :  { %797 = vmatpush1.bf16.msra.mxu0 %v1242_v13 }
  0x63   :  { %798 = vmatprep.subr.bf16.mxu0 %v1247_v14  ;;  %782 = vmatmul.mubr.bf16.gmra.mrb[8].mxu1 %v1376_v15 }
  0x64   :  { %1119 = vmatpush1.bf16.msra.mxu1 %v1245_v16  ;;  %832 = vmatprep.mubr.bf16.mxu1 %v1266_v4 }
  0x65   :  { %1104 = vmatprep.subr.bf16.mxu1 %v1250_v17  ;;  %721 = vmatmul.mubr.bf16.gmra.mrb[8].mxu0 %v1376_v15 }
  0x66   :  { %799 = vmatpush1.bf16.msra.mxu0 %v1245_v16  ;;  %822 = vmatprep.mubr.bf16.mxu0 %v1348_v47  ;;  %v145_v47 = vsub.s32 3, %v132_v40 }
  0x67   :  { %800 = vmatprep.subr.bf16.mxu0 %v1250_v17 }
  0x68   :  { %1120 = vmatpush1.bf16.msra.mxu1 %v1248_v18  ;;  %v146_v51 = vrot.slane %v129_v42, %v145_v47 }
  0x69   :  { %1105 = vmatprep.subr.bf16.mxu1 %v1253_v19 }
  0x6a   :  { %801 = vmatpush1.bf16.msra.mxu0 %v1248_v18 }
  0x6b   :  { %802 = vmatprep.subr.bf16.mxu0 %v1253_v19 }
  0x6c   :  { %1121 = vmatpush1.bf16.msra.mxu1 %v1251_v20 }
  0x6d   :  { %1106 = vmatprep.subr.bf16.mxu1 %v1256_v21 }
  0x6e   :  { %803 = vmatpush1.bf16.msra.mxu0 %v1251_v20 }
  0x6f   :  { %804 = vmatprep.subr.bf16.mxu0 %v1256_v21 }
  0x70   :  { %1122 = vmatpush1.bf16.msra.mxu1 %v1254_v22 }
  0x71   :  { %1107 = vmatprep.subr.bf16.mxu1 %v1259_v23 }
  0x72   :  { %805 = vmatpush1.bf16.msra.mxu0 %v1254_v22 }
  0x73   :  { %806 = vmatprep.subr.bf16.mxu0 %v1259_v23 }
  0x74   :  { %1123 = vmatpush1.bf16.msra.mxu1 %v1257_v24 }
  0x75   :  { %1108 = vmatprep.subr.bf16.mxu1 %v1262_v25 }
  0x76   :  { %807 = vmatpush1.bf16.msra.mxu0 %v1257_v24 }
  0x77   :  { %808 = vmatprep.subr.bf16.mxu0 %v1262_v25 }
  0x78   :  { %1124 = vmatpush1.bf16.msra.mxu1 %v1260_v26 }
  0x79   :  { %1109 = vmatprep.subr.bf16.mxu1 %v1265_v27 }
  0x7a   :  { %809 = vmatpush1.bf16.msra.mxu0 %v1260_v26 }
  0x7b   :  { %810 = vmatprep.subr.bf16.mxu0 %v1265_v27 }
  0x7c   :  { %1125 = vmatpush1.bf16.msra.mxu1 %v1263_v28 }
  0x7d   :  { %1110 = vmatprep.subr.bf16.mxu1 %v1270_v29 }
  0x7e   :  { %811 = vmatpush1.bf16.msra.mxu0 %v1263_v28 }
  0x7f   :  { %812 = vmatprep.subr.bf16.mxu0 %v1270_v29 }
  0x80   :  { %1126 = vmatpush1.bf16.msra.mxu1 %v1268_v30 }
  0x81   :  { %1111 = vmatprep.subr.bf16.mxu1 %v1274_v31 }
  0x82   :  { %813 = vmatpush1.bf16.msra.mxu0 %v1268_v30 }
  0x83   :  { %814 = vmatprep.subr.bf16.mxu0 %v1274_v31 }
  0x84   :  { %1127 = vmatpush1.bf16.msra.mxu1 %v1272_v32 }
  0x85   :  { %1112 = vmatprep.subr.bf16.mxu1 %v1278_v33 }
  0x86   :  { %815 = vmatpush1.bf16.msra.mxu0 %v1272_v32 }
  0x87   :  { %816 = vmatprep.subr.bf16.mxu0 %v1278_v33 }
  0x88   :  { %1128 = vmatpush1.bf16.msra.mxu1 %v1276_v34 }
  0x89   :  { %1113 = vmatprep.subr.bf16.mxu1 %v1282_v35 }
  0x8a   :  { %817 = vmatpush1.bf16.msra.mxu0 %v1276_v34 }
  0x8b   :  { %818 = vmatprep.subr.bf16.mxu0 %v1282_v35 }
  0x8c   :  { %1129 = vmatpush1.bf16.msra.mxu1 %v1280_v36 }
  0x8d   :  { %1114 = vmatprep.subr.bf16.mxu1 %v1285_v37 }
  0x8e   :  { %819 = vmatpush1.bf16.msra.mxu0 %v1280_v36 }
  0x8f   :  { %820 = vmatprep.subr.bf16.mxu0 %v1285_v37 }
  0x90   :  { %1130 = vmatpush1.bf16.msra.mxu1 %v1283_v38 }
  0x92   :  { %821 = vmatpush1.bf16.msra.mxu0 %v1283_v38 }
  0x93   :  { %833 = vmatmul.mubr.bf16.vlgmr.msra.gmra.mrb[12].mxu1 %v1368_v9 }
  0x94   :  { %842 = vmatprep.mubr.bf16.mxu1 %v1370_v11 }
  0x95   :  { %823 = vmatmul.mubr.bf16.vlgmr.msra.gmra.mrb[12].mxu0 %v1355_v2 }
  0x9b   :  { %843 = vmatmul.mubr.bf16.gmra.mrb[16].mxu1 %v1376_v15 }
 0x126   :  { %v763_v53 = vpop.f32.mrb[0].mxu1 }
 0x127   :  { %v764_v55 = vadd.f32 %v763_v53, %v142_v50  ;;  %v765_v56 = vpop.f32.mrb[1].mxu1 }
 0x128   :  { %v766_v57 = vadd.f32 %v765_v56, %v146_v51  ;;  %v767_v58 = vpop.f32.mrb[2].mxu1  ;;  %v702_v59 = vpop.f32.mrb[0].mxu0 }
 0x129   :  { %v768_v60 = vadd.f32 %v767_v58, %v142_v50  ;;  %v769_v61 = vpop.f32.mrb[3].mxu1  ;;  %v703_v62 = vadd.f32 %v702_v59, %v134_v52  ;;  %v704_v63 = vpop.f32.mrb[1].mxu0 }
 0x12a   :  { %v1085_v0 = vpack.c.bf16 %v766_v57, %v764_v55  ;;  %v770_v1 = vadd.f32 %v769_v61, %v146_v51  ;;  %v705_v2 = vadd.f32 %v704_v63, %v138_v54  ;;  %v706_v3 = vpop.f32.mrb[2].mxu0 }
 0x12b   :  { %v707_v4 = vadd.f32 %v706_v3, %v134_v52  ;;  %v708_v5 = vpop.f32.mrb[3].mxu0 }
 0x12c   :  { %948 = vst [vmem:[%s1450_s3 + $0x8] sm:$0xff] %v1085_v0  ;;  %v1088_v6 = vpack.c.bf16 %v770_v1, %v768_v60  ;;  %v1084_v7 = vpack.c.bf16 %v705_v2, %v703_v62  ;;  %v709_v8 = vadd.f32 %v708_v5, %v138_v54 }
 0x12e   :  { %951 = vst [vmem:[%s1450_s3 + $0x20] sm:$0xff] %v1088_v6  ;;  %947 = vst [vmem:[%s1450_s3] sm:$0xff] %v1084_v7  ;;  %v1087_v9 = vpack.c.bf16 %v709_v8, %v707_v4  ;;  %v773_v10 = vpop.f32.mrb[4].mxu1 }
 0x12f   :  { %v774_v11 = vadd.f32 %v773_v10, %v142_v50  ;;  %v775_v12 = vpop.f32.mrb[5].mxu1 }
 0x130   :  { %950 = vst [vmem:[%s1450_s3 + $0x18] sm:$0xff] %v1087_v9  ;;  %v776_v13 = vadd.f32 %v775_v12, %v146_v51  ;;  %v777_v14 = vpop.f32.mrb[6].mxu1  ;;  %v712_v15 = vpop.f32.mrb[4].mxu0 }
 0x131   :  { %v778_v16 = vadd.f32 %v777_v14, %v142_v50  ;;  %v779_v17 = vpop.f32.mrb[7].mxu1  ;;  %v713_v18 = vadd.f32 %v712_v15, %v134_v52  ;;  %v714_v19 = vpop.f32.mrb[5].mxu0 }
 0x132   :  { %v1091_v20 = vpack.c.bf16 %v776_v13, %v774_v11  ;;  %v780_v21 = vadd.f32 %v779_v17, %v146_v51  ;;  %v715_v22 = vadd.f32 %v714_v19, %v138_v54  ;;  %v716_v23 = vpop.f32.mrb[6].mxu0 }
 0x133   :  { %v717_v24 = vadd.f32 %v716_v23, %v134_v52  ;;  %v718_v25 = vpop.f32.mrb[7].mxu0 }
 0x134   :  { %954 = vst [vmem:[%s1450_s3 + $0x38] sm:$0xff] %v1091_v20  ;;  %v1094_v26 = vpack.c.bf16 %v780_v21, %v778_v16  ;;  %v1090_v27 = vpack.c.bf16 %v715_v22, %v713_v18  ;;  %v719_v28 = vadd.f32 %v718_v25, %v138_v54 }
 0x136   :  { %957 = vst [vmem:[%s1450_s3 + $0x50] sm:$0xff] %v1094_v26  ;;  %953 = vst [vmem:[%s1450_s3 + $0x30] sm:$0xff] %v1090_v27  ;;  %v783_v29 = vpop.f32.mrb[8].mxu1  ;;  %v1093_v30 = vpack.c.bf16 %v719_v28, %v717_v24 }
 0x137   :  { %v784_v31 = vadd.f32 %v783_v29, %v142_v50  ;;  %v785_v32 = vpop.f32.mrb[9].mxu1 }
 0x138   :  { %956 = vst [vmem:[%s1450_s3 + $0x48] sm:$0xff] %v1093_v30  ;;  %v786_v33 = vadd.f32 %v785_v32, %v146_v51  ;;  %v787_v34 = vpop.f32.mrb[10].mxu1  ;;  %v722_v35 = vpop.f32.mrb[8].mxu0 }
 0x139   :  { %v788_v36 = vpop.f32.mrb[11].mxu1  ;;  %v723_v37 = vadd.f32 %v722_v35, %v134_v52  ;;  %v724_v38 = vpop.f32.mrb[9].mxu0 }
 0x13a   :  { %v1097_v39 = vpack.c.bf16 %v786_v33, %v784_v31  ;;  %v725_v40 = vadd.f32 %v724_v38, %v138_v54  ;;  %v726_v41 = vpop.f32.mrb[10].mxu0 }
 0x13b   :  { %v727_v42 = vpop.f32.mrb[11].mxu0 }
 0x13c   :  { %960 = vst [vmem:[%s1450_s3 + $0x68] sm:$0xff] %v1097_v39  ;;  %v1096_v44 = vpack.c.bf16 %v725_v40, %v723_v37 }
 0x13e   :  { %959 = vst [vmem:[%s1450_s3 + $0x60] sm:$0xff] %v1096_v44 }
 0x166   :  { %v834_v46 = vpop.f32.mrb[12].mxu1 }
 0x167   :  { %v835_v47 = vadd.f32 %v834_v46, %v1388_v43  ;;  %v836_v48 = vpop.f32.mrb[13].mxu1 }
 0x168   :  { %v837_v49 = vadd.f32 %v836_v48, %v1390_v45  ;;  %v838_v50 = vpop.f32.mrb[14].mxu1  ;;  %v824_v51 = vpop.f32.mrb[12].mxu0 }
 0x169   :  { %v839_v52 = vadd.f32 %v838_v50, %v1388_v43  ;;  %v825_v53 = vadd.f32 %v824_v51, %v1388_v43  ;;  %v840_v54 = vpop.f32.mrb[15].mxu1  ;;  %v826_v55 = vpop.f32.mrb[13].mxu0 }
 0x16a   :  { %v1092_v56 = vpack.c.bf16 %v837_v49, %v835_v47  ;;  %v841_v57 = vadd.f32 %v840_v54, %v1390_v45  ;;  %v827_v58 = vadd.f32 %v826_v55, %v1390_v45  ;;  %v828_v59 = vpop.f32.mrb[14].mxu0 }
 0x16b   :  { %v829_v60 = vadd.f32 %v828_v59, %v1388_v43  ;;  %v830_v61 = vpop.f32.mrb[15].mxu0 }
 0x16c   :  { %955 = vst [vmem:[%s1450_s3 + $0x40] sm:$0xff] %v1092_v56  ;;  %v1095_v62 = vpack.c.bf16 %v841_v57, %v839_v52  ;;  %v1086_v63 = vpack.c.bf16 %v827_v58, %v825_v53  ;;  %v831_v0 = vadd.f32 %v830_v61, %v1390_v45 }
 0x16e   :  { %958 = vst [vmem:[%s1450_s3 + $0x58] sm:$0xff] %v1095_v62  ;;  %949 = vst [vmem:[%s1450_s3 + $0x10] sm:$0xff] %v1086_v63  ;;  %v1089_v1 = vpack.c.bf16 %v831_v0, %v829_v60  ;;  %v844_v2 = vpop.f32.mrb[16].mxu1 }
 0x16f   :  { %v845_v3 = vadd.f32 %v844_v2, %v1388_v43  ;;  %v846_v4 = vpop.f32.mrb[17].mxu1 }
 0x170   :  { %952 = vst [vmem:[%s1450_s3 + $0x28] sm:$0xff] %v1089_v1  ;;  %v847_v5 = vadd.f32 %v846_v4, %v1390_v45  ;;  %v848_v6 = vpop.f32.mrb[18].mxu1 }
 0x171   :  { %v849_v7 = vpop.f32.mrb[19].mxu1 }
 0x172   :  { %v1098_v8 = vpack.c.bf16 %v847_v5, %v845_v3 }
 0x174   :  { %961 = vst [vmem:[%s1450_s3 + $0x70] sm:$0xff] %v1098_v8 }
 0x175   :  { %966 = vsyncpa [#allocation3], 1 }

</bundles_post_ra>
